<compile_context>
chip_gen: v5e
topology: v5e:2x2
jax: 0.10.0
libtpu: 0.0.40
codegen_flags: <defaults>
</compile_context>

<pallas_src>
import functools

import jax
import jax.numpy as jnp
import numpy as np
from jax.experimental import pallas as pl
from jax.experimental.pallas import tpu as pltpu


# Below this per-array element count, launch/DMA-setup overhead dominates: use plain XLA.
_PALLAS_MIN_ELEMS = 1 << 16  # 64K f32 elems ~= 256 KiB


def _cdiv(a, b):
    return -(-a // b)


def _round_down8(x):
    return max(8, (x // 8) * 8)


@functools.lru_cache(maxsize=None)
def _tpu_vmem_config():
    """(per-kernel double-buffered f32 block budget, scoped-VMEM limit) per generation.

    v7x has 64 MiB physical VMEM per TensorCore (scoped default 32 MiB); v5e/v6e have
    128 MiB physical (scoped defaults 16/32 MiB).  We set vmem_limit_bytes explicitly so
    the multi-MiB tiles never trip the scoped default.
    """
    phys = 128 << 20
    try:
        info = pltpu.get_tpu_info()
        phys = int(getattr(info, "vmem_capacity_bytes", phys))
    except Exception:
        pass  # not queryable at build time / API drift -> conservative default below
    if phys <= (64 << 20):          # v7x-class: keep working set well under 64 MiB
        return 10 << 20, 28 << 20
    return 16 << 20, 48 << 20       # v5e / v6e: 128 MiB physical, plenty of headroom


def _pick_row_tile(n_rows, d, f32_streams, budget_bytes, min_steps=2):
    """Rows per grid block.

    Sized by BYTES (multi-MiB blocks, no fixed row cap), forced to give at least
    `min_steps` grid steps (so input/output DMA overlaps and v7x's 2nd TC gets work),
    nudged toward an even step count, rows kept a multiple of 8 (sublane granularity).
    `f32_streams` counts every double-buffered f32 block that lives per row tile
    (inputs + outputs + compiler temporaries).
    """
    if n_rows <= 8:
        return 8
    max_rows = _round_down8(max(8, budget_bytes // (2 * 4 * d * f32_streams)))
    tile = max(8, min(max_rows, _round_down8(_cdiv(n_rows, min_steps))))
    steps = _cdiv(n_rows, tile)
    if steps > 1 and steps % 2 == 1:
        alt = _round_down8(_cdiv(n_rows, steps + 1))
        if _cdiv(n_rows, alt) % 2 == 0:
            tile = alt
    return tile


# ----------------------------------------------------------------------------
# Kernel 1: per-element "cosine" scores of query rows against the prototype.
# ----------------------------------------------------------------------------
def _cosine_kernel(proto_ref, query_ref, scores_ref):
    q = query_ref[...].astype(jnp.float32)                # [TILE_Q, D]
    p = proto_ref[...].astype(jnp.float32)                # [1, D], broadcast over rows
    num = q * p
    # torch's F.cosine_similarity clamps EACH norm (here just |q| and |p|) at eps
    # before multiplying; keep that exact form (product-clamp differs when both tiny).
    den = jnp.maximum(jnp.abs(q), 1e-8) * jnp.maximum(jnp.abs(p), 1e-8)
    scores_ref[...] = (num / den).astype(scores_ref.dtype)


def cosine_scores(proto, query):
    n_q, d = query.shape
    budget, vmem_limit = _tpu_vmem_config()
    # f32 streams per row tile: query in, scores out, ~2 compiler temporaries
    tile_q = _pick_row_tile(n_q, d, f32_streams=4, budget_bytes=budget)
    return pl.pallas_call(
        _cosine_kernel,
        out_shape=jax.ShapeDtypeStruct((n_q, d), jnp.float32),
        grid=(_cdiv(n_q, tile_q),),
        in_specs=[
            pl.BlockSpec((1, d), lambda i: (0, 0)),          # prototype, resident
            pl.BlockSpec((tile_q, d), lambda i: (i, 0)),     # query rows, pipelined
        ],
        out_specs=pl.BlockSpec((tile_q, d), lambda i: (i, 0)),
        compiler_params=pltpu.CompilerParams(
            dimension_semantics=("parallel",),
            vmem_limit_bytes=vmem_limit,
        ),
    )(proto, query)


# ----------------------------------------------------------------------------
# Kernel 2: attention maps (optional writeback) + masked / unmasked features.
#   Grid only over feature rows ("parallel"); classes are unrolled in-kernel.
# ----------------------------------------------------------------------------
def _attn_mask_kernel(w_ref, m_ref, *out_refs, num_classes, emit_maps):
    if emit_maps:
        amap_ref, masked_ref, unmasked_ref = out_refs
    else:
        masked_ref, unmasked_ref = out_refs
    m = m_ref[...].astype(jnp.float32)                     # [TILE_M, D]
    w = w_ref[...].astype(jnp.float32)                     # [C, D], small, resident
    masked = jnp.zeros_like(m)
    unmasked = jnp.zeros_like(m)
    for c in range(num_classes):                           # C is small and static
        a = jnp.maximum(w[c:c + 1, :] * m, 0.0)            # relu(w_c_k.view(1,-1) * M)
        if emit_maps:
            amap_ref[c] = a.astype(amap_ref.dtype)         # attention_maps[c]
        s = jax.nn.sigmoid(a)                              # Mask_c (EUP)
        masked = masked + s * m                            # same accumulation order
        unmasked = unmasked + (1.0 - s) * m                # as the torch loop
    masked_ref[...] = masked.astype(masked_ref.dtype)
    unmasked_ref[...] = unmasked.astype(unmasked_ref.dtype)


def apply_attention(w, features, *, emit_attention_maps=True):
    c_cls, d = w.shape
    n_m, _ = features.shape
    budget, vmem_limit = _tpu_vmem_config()
    # f32 streams per row tile: features in + masked + unmasked out
    # + ~3 compiler temporaries (f32 upcast of m, accumulators, per-class a)
    # + C attention-map slices when they are written back.
    streams = 6 + (c_cls if emit_attention_maps else 0)
    tile_m = _pick_row_tile(n_m, d, f32_streams=streams, budget_bytes=budget)
    kernel = functools.partial(
        _attn_mask_kernel, num_classes=c_cls, emit_maps=emit_attention_maps
    )
    out_shape = [
        jax.ShapeDtypeStruct((n_m, d), jnp.float32),           # masked
        jax.ShapeDtypeStruct((n_m, d), jnp.float32),           # unmasked
    ]
    out_specs = [
        pl.BlockSpec((tile_m, d), lambda i: (i, 0)),
        pl.BlockSpec((tile_m, d), lambda i: (i, 0)),
    ]
    if emit_attention_maps:
        out_shape = [jax.ShapeDtypeStruct((c_cls, n_m, d), jnp.float32)] + out_shape
        out_specs = [pl.BlockSpec((c_cls, tile_m, d), lambda i: (0, i, 0))] + out_specs
    return pl.pallas_call(
        kernel,
        out_shape=tuple(out_shape),
        grid=(_cdiv(n_m, tile_m),),
        in_specs=[
            pl.BlockSpec((c_cls, d), lambda i: (0, 0)),        # w table, resident
            pl.BlockSpec((tile_m, d), lambda i: (i, 0)),       # feature rows, pipelined
        ],
        out_specs=tuple(out_specs),
        compiler_params=pltpu.CompilerParams(
            dimension_semantics=("parallel",),
            vmem_limit_bytes=vmem_limit,
        ),
    )(w, features)


# ----------------------------------------------------------------------------
# Pure-JAX references (also used as the small-problem fast path).
# ----------------------------------------------------------------------------
def _cosine_ref(proto, query):
    q = query.astype(jnp.float32)
    p = proto.astype(jnp.float32)
    return (q * p) / (jnp.maximum(jnp.abs(q), 1e-8) * jnp.maximum(jnp.abs(p), 1e-8))


def _attention_ref(w, features):
    m = features.astype(jnp.float32)
    wf = w.astype(jnp.float32)
    a = jnp.maximum(wf[:, None, :] * m[None, :, :], 0.0)       # [C, N, D]
    s = jax.nn.sigmoid(a)
    masked = jnp.sum(s * m[None], axis=0)
    unmasked = jnp.sum((1.0 - s) * m[None], axis=0)
    return a, masked, unmasked


# ----------------------------------------------------------------------------
# Module wrapper
# ----------------------------------------------------------------------------
def attention_mask_generator(features, support, query, num_classes, temp=1.0,
                             use_pallas=None):
    del temp  # unused in the torch forward as well

    n_q, d = query.shape
    n_m = features.shape[0]
    if use_pallas is None:
        # Tiny problems: two pallas_call launches + DMA setup dwarf the HBM traffic.
        use_pallas = max(n_q * d, n_m * d) >= _PALLAS_MIN_ELEMS

    # Class prototype: tiny [N_s, D] -> [1, D] reduction, hoisted out of the row-tiled
    # kernel so every query tile is pure lane-wise VPU work.
    proto = jnp.mean(support.astype(jnp.float32), axis=0, keepdims=True)

    scores = cosine_scores(proto, query) if use_pallas else _cosine_ref(proto, query)

    # torch.autograd.grad(scores.mean(0)[c], M, allow_unused=True) is None (scores has
    # no dependence on `features`), so torch falls back to zeros: w_c_k == 0 for every
    # class and attention_maps == relu(0 * M) == 0.  Skipping the C*N*D writeback of
    # zeros removes ~57% of the attention kernel's HBM bytes at C=4.
    # TODO(synk): no Pallas equivalent of torch.autograd.grad; if scores ever depended
    # on `features`, w would have to come from jax.grad and emit_attention_maps=True.
    w = jnp.zeros((num_classes, d), dtype=jnp.float32)
    attention_maps = jnp.zeros((num_classes, n_m, d), jnp.float32)

    if use_pallas:
        masked, unmasked = apply_attention(w, features, emit_attention_maps=False)
    else:
        _, masked, unmasked = _attention_ref(w, features)

    return attention_maps, scores, masked, unmasked


if __name__ == "__main__":
    num_classes = 4
    n_support, n_query, n_feat, dim = 8, 32, 64, 128

    key = jax.random.PRNGKey(0)
    k1, k2, k3, k4 = jax.random.split(key, 4)
    features = jax.random.normal(k1, (n_feat, dim), dtype=jnp.float32)
    support = jax.random.normal(k2, (n_support, dim), dtype=jnp.float32)
    query = jax.random.normal(k3, (n_query, dim), dtype=jnp.float32)

    # Force the Pallas path (the auto heuristic would pick plain XLA at these sizes).
    amaps, scores, masked, unmasked = attention_mask_generator(
        features, support, query, num_classes, use_pallas=True
    )
    jax.block_until_ready((amaps, scores, masked, unmasked))

    # Pure-JAX reference check (matches the torch module's forward exactly).
    proto = jnp.mean(support, axis=0, keepdims=True)
    scores_ref = _cosine_ref(proto, query)
    amaps_ref = jnp.zeros((num_classes, n_feat, dim), jnp.float32)
    masked_ref = 0.5 * num_classes * features
    unmasked_ref = 0.5 * num_classes * features

    np.testing.assert_allclose(np.asarray(scores), np.asarray(scores_ref), rtol=1e-5, atol=1e-5)
    np.testing.assert_allclose(np.asarray(amaps), np.asarray(amaps_ref), rtol=1e-5, atol=1e-5)
    np.testing.assert_allclose(np.asarray(masked), np.asarray(masked_ref), rtol=1e-5, atol=1e-5)
    np.testing.assert_allclose(np.asarray(unmasked), np.asarray(unmasked_ref), rtol=1e-5, atol=1e-5)

    # Exercise the general attention path (non-zero w, attention-map writeback) so that
    # branch also compiles and runs on TPU.
    w_test = 0.1 * jax.random.normal(k4, (num_classes, dim), dtype=jnp.float32)
    amaps2, masked2, unmasked2 = apply_attention(w_test, features, emit_attention_maps=True)
    jax.block_until_ready((amaps2, masked2, unmasked2))
    amaps2_ref, masked2_ref, unmasked2_ref = _attention_ref(w_test, features)
    np.testing.assert_allclose(np.asarray(amaps2), np.asarray(amaps2_ref), rtol=1e-5, atol=1e-5)
    np.testing.assert_allclose(np.asarray(masked2), np.asarray(masked2_ref), rtol=1e-5, atol=1e-5)
    np.testing.assert_allclose(np.asarray(unmasked2), np.asarray(unmasked2_ref), rtol=1e-5, atol=1e-5)

    # Auto path (plain-XLA fast route at these tiny shapes) must agree as well.
    _, scores_a, masked_a, _ = attention_mask_generator(features, support, query, num_classes)
    np.testing.assert_allclose(np.asarray(scores_a), np.asarray(scores_ref), rtol=1e-5, atol=1e-5)
    np.testing.assert_allclose(np.asarray(masked_a), np.asarray(masked_ref), rtol=1e-5, atol=1e-5)

    print("KERNEL_OK")
</pallas_src>

<mosaic_0001>
module attributes {stable_mosaic.version = 11 : i64} {
  func.func @_cosine_kernel(%arg0: i32, %arg1: memref<1x128xf32, #tpu.memory_space<vmem>>, %arg2: memref<16x128xf32, #tpu.memory_space<vmem>>, %arg3: memref<16x128xf32, #tpu.memory_space<vmem>>) attributes {dimension_semantics = [#tpu.dimension_semantics<parallel>], iteration_bounds = array<i64: 2>, scalar_prefetch = 0 : i64, scratch_operands = 0 : i64, tpu.core_type = #tpu.core_type<tc>, window_params = [{pipeline_mode = #tpu.pipeline_mode<synchronous>, transform_indices = @transform_0, window_bounds = array<i64: 1, 128>}, {transform_indices = @transform_1, window_bounds = array<i64: 16, 128>}, {transform_indices = @transform_2, window_bounds = array<i64: 16, 128>}]} {
    %c0 = arith.constant 0 : index
    %c0_0 = arith.constant 0 : index
    %0 = vector.load %arg2[%c0, %c0_0] : memref<16x128xf32, #tpu.memory_space<vmem>>, vector<16x128xf32>
    %c0_1 = arith.constant 0 : index
    %c0_2 = arith.constant 0 : index
    %1 = vector.load %arg1[%c0_1, %c0_2] : memref<1x128xf32, #tpu.memory_space<vmem>>, vector<1x128xf32>
    %2 = vector.broadcast %1 : vector<1x128xf32> to vector<16x128xf32>
    %3 = arith.mulf %0, %2 : vector<16x128xf32>
    %4 = math.absf %0 : vector<16x128xf32>
    %cst = arith.constant 9.99999993E-9 : f32
    %5 = vector.broadcast %cst : f32 to vector<16x128xf32>
    %6 = arith.maximumf %4, %5 : vector<16x128xf32>
    %7 = math.absf %1 : vector<1x128xf32>
    %cst_3 = arith.constant 9.99999993E-9 : f32
    %8 = vector.broadcast %cst_3 : f32 to vector<1x128xf32>
    %9 = arith.maximumf %7, %8 : vector<1x128xf32>
    %10 = vector.broadcast %9 : vector<1x128xf32> to vector<16x128xf32>
    %11 = arith.mulf %6, %10 : vector<16x128xf32>
    %12 = arith.divf %3, %11 : vector<16x128xf32>
    %c0_4 = arith.constant 0 : index
    %c0_5 = arith.constant 0 : index
    %13 = vector.load %arg3[%c0_4, %c0_5] : memref<16x128xf32, #tpu.memory_space<vmem>>, vector<16x128xf32>
    tpu.vector_store %arg3[%c0_4, %c0_5], %12 {strides = array<i32>} : memref<16x128xf32, #tpu.memory_space<vmem>>, vector<16x128xf32>,
    return
  }
  func.func @transform_0(%arg0: i32) -> (i32, i32) {
    %c0_i32 = arith.constant 0 : i32
    %c0_i32_0 = arith.constant 0 : i32
    %c0_i32_1 = arith.constant 0 : i32
    return %c0_i32, %c0_i32_0 : i32, i32
  }
  func.func @transform_1(%arg0: i32) -> (i32, i32) {
    %c0_i32 = arith.constant 0 : i32
    %c0_i32_0 = arith.constant 0 : i32
    return %arg0, %c0_i32 : i32, i32
  }
  func.func @transform_2(%arg0: i32) -> (i32, i32) {
    %c0_i32 = arith.constant 0 : i32
    %c0_i32_0 = arith.constant 0 : i32
    return %arg0, %c0_i32 : i32, i32
  }
}

</mosaic_0001>

<bundles_post_ra>
// kernel: tpu_custom_call.1
= control target key start
LH: loop header
LB: loop body
LE: loop exit
PB: predicated region body
PF: predicated region fallthrough
CT: control target
= control target key end

     0   :  { %7 = vsyncpa [#allocation3], 0  ;;  %s721_s0 = inlined_call_operand.hbm [shape: f32[1,128], index: 0, kind: input, shape index: {}]   ;;  %s722_s1 = inlined_call_operand.hbm [shape: f32[32,128], index: 1, kind: input, shape index: {}]   ;;  %s723_s2 = inlined_call_operand.hbm [shape: f32[32,128], index: 2, kind: output, shape index: {}]  }
   0x1   :  { %8 = vsyncpa [#allocation6], 0 }
   0x2   :  { %10 = vsyncpa [#allocation6 + $0x1], 0 }
   0x3   :  { %11 = vsyncpa [#allocation4], 0 }
   0x4   :  { %13 = vsyncpa [#allocation4 + $0x1], 0  ;;  %s569_s9 = smov 0   ;;  %s571_s10 = smov 0  }
   0x5   :  { %s573_s11 = smov 0   ;;  %s575_s12 = smov 0  }
   0x6 LB: > { %s590_s13 = sadd.s32 4294967295, %s547_s12   ;;  %s333_s14 = sadd.s32 4294967294, %s547_s12   ;;  %s547_s12 = sphi %s575_s12, %s736_s12   ;;  %s543_s11 = sphi %s573_s11, %s735_s11   ;;  %s539_s10 = sphi %s571_s10, %s734_s10   ;;  %s535_s9 = sphi %s569_s9, %s733_s9  }
   0x7   : > { %s594_s15 = sadd.s32 1, %s547_s12   ;;  %s47_s16 = sadd.s32 1, %s543_s11 }
   0x8   : > { %s44_s17 = ssub.s32 %s547_s12, %s594_s15  ;;  %p54_p0 = scmp.ne.s32.totalorder %s543_s11, %s539_s10 }
   0x9   : > { %p45_p1 = scmp.eq.s32.totalorder %s44_s17, 0  ;;  %p55_p2 = scmp.eq.s32.totalorder %s547_s12, 0 }
   0xa   : > { %p60_p3 = scmp.ne.s32.totalorder %s539_s10, %s535_s9  ;;  %p61_p4 = scmp.eq.s32.totalorder %s590_s13, 0 }
   0xb   : > { %s606_s18 = scalar_select %p45_p1, %s543_s11, %s47_s16  }
   0xc   : > { %p608_p5 = por %p55_p2, %p54_p0  ;;  %p614_p6 = por %p61_p4, %p60_p3 }
   0xd   : > { %p84_p7 = scmp.eq.s32.totalorder %s590_s13, 1  ;;  %p90_p8 = scmp.eq.s32.totalorder %s333_s14, 1 }
   0xe   : > { %p334_p9 = scmp.ge.s32.totalorder %s547_s12, 1  ;;  %p97_p10 = scmp.lt.s32.totalorder %s547_s12, 3 }
   0xf   : > { %p621_p11 = por %p84_p7, %p54_p0  ;;  %p625_p12 = por %p90_p8, %p60_p3 }
  0x10   : > { %p629_p13 = pnand %p334_p9, %p97_p10  ;;  %s109_s26 = sshll.u32 %s721_s0, 4  ;;  %s110_s26 = int_to_ptr.hbm [resolvable:$true] %s109_s26 }
  0x11   : > { %s549_s27 = smov [#allocation2]   ;;  %p372_p3 = scmp.lt.s32.totalorder %s547_s12, 2 }
  0x12   : > { %p359_p1 = pneg %p629_p13  ;;  %s111_s28 = sshll.u32 %s549_s27, 4  ;;  %s112_s28 = int_to_ptr.vmem [resolvable:$true] %s111_s28 }
  0x13   : > { %s122_s29 = sand.u32 1, %s543_s11   ;;  %p645_p7 = pnand %p372_p3, %p608_p5 }
  0x14   : > { %p360_p2 = pnand %p359_p1, %p61_p4  ;;  %s337_s3 = sshll.u32 %s122_s29, 4 }
  0x15   : > { %s349_s4 = sshll.u32 %s547_s12, 4  ;;  %s126_s14 = scalar_lea.vmem [#allocation5], %s337_s3 }
  0x16   : > { %362 = dma.hbm_to_vmem [thread:$0]  (!%p360_p2), %s110_s26, 16, %s112_s28, [#allocation3]  }
  0x17   : > { %s131_s7 = scalar_lea.hbm %s722_s1, %s349_s4  ;;  %s134_s16 = sshll.u32 %s126_s14, 4  ;;  %s135_s16 = int_to_ptr.vmem [resolvable:$true] %s134_s16 }
  0x18   : > { %s132_s8 = sshll.u32 %s131_s7, 4  ;;  %s123_s17 = scalar_lea.sflag [#allocation6], %s122_s29  ;;  %s133_s8 = int_to_ptr.hbm [resolvable:$true] %s132_s8 }
  0x19   : > { %s447_s24 = sshra.s32 %s133_s8, 4  ;;  %p451_p8 = pneg %p645_p7  ;;  %s448_s24 = int_to_ptr.hbm [resolvable:$true] %s447_s24 }
  0x1a   : > { %s449_s19 = scalar_lea.hbm %s448_s24, 16  ;;  %s454_s27 = scalar_lea.hbm %s722_s1, 32 }
  0x1b   : > { %p450_p5 = scmp.ne.s32.totalorder %s448_s24, %s449_s19  ;;  %p455_p1 = scmp.lt.s32.totalorder %s448_s24, %s722_s1 }
  0x1c   : > { %p456_p2 = scmp.lt.s32.totalorder %s454_s27, %s449_s19 }
  0x1d   : > { %p452_p9 = pnand %p451_p8, %p450_p5 }
  0x1e   : > { %p457_p3 = por %p456_p2, %p455_p1 }
  0x1f   : > { %p453_p10 = pneg %p452_p9 }
  0x21   : > { %p458_p0 = pnand %p457_p3, %p453_p10 }
  0x23   : > { %461 = shalt.err (!%p458_p0)
}
  0x24   : > { %s550_s29 = smov 128   ;;  %s551_s3 = smov 8  }
  0x25   : > { %366 = dma.hbm_to_vmem [thread:$0]  (!%p645_p7), %s133_s8, 256, %s135_s16, %s123_s17, %s550_s29, %s550_s29, %s551_s3  }
  0x26   : > { %146 = sbr.rel (%p629_p13) target bundleno = 81 (0x51), region = 28 }
  0x2b   : > { %522 = dma.done.wait (%p61_p4), [#allocation3], 16  }
  0x2c   : > { %524 = vsyncadd (%p61_p4), [#allocation3], 4294967280  ;;  %s670_s5 = sand.u32 1, %s539_s10  }
  0x2d   : > { %s342_s6 = sshll.u32 %s670_s5, 4  ;;  %s154_s7 = scalar_lea.sflag [#allocation6], %s670_s5 }
  0x2e   : > { %s157_s30 = scalar_lea.vmem [#allocation5], %s342_s6 }
  0x2f   : > { %526 = dma.done.wait (%p614_p6), %s154_s7, 256  }
  0x30   : > { %528 = vsyncadd (%p614_p6), %s154_s7, 4294967040  ;;  %v181_v0 = vld [vmem:[%s157_s30] sm:$0xff]  ;;  %v183_v1 = vld [vmem:[#allocation2] sm:$0x1]  ;;  %s350_s20 = sshll.u32 %s590_s13, 4  ;;  %s178_s14 = scalar_lea.vmem [#allocation7], %s342_s6 }
  0x31   : > { %v189_v2 = vand.u32 2147483647, %v181_v0  ;;  %v193_v3 = vand.u32 2147483647, %v183_v1  ;;  %v182_v4 = vld [vmem:[%s157_s30 + $0x8] sm:$0xff]  ;;  %s244_s13 = scalar_lea.hbm %s723_s2, %s350_s20  ;;  %s245_s16 = sshll.u32 %s178_s14, 4  ;;  %s246_s16 = int_to_ptr.vmem [resolvable:$true] %s245_s16 }
  0x32   : > { %v190_v5 = vand.u32 2147483647, %v182_v4  ;;  %v412_v17 = vld [vmem:[#allocation2] ss:$0 sm:$0xff]  ;;  %s247_s17 = sshll.u32 %s244_s13, 4  ;;  %s233_s24 = scalar_lea.sflag [#allocation4], %s670_s5  ;;  %s248_s17 = int_to_ptr.hbm [resolvable:$true] %s247_s17 }
  0x33   : > { %v191_v6 = vmax.f32 %v189_v2, 1e-08  ;;  %v194_v7 = vmax.f32 %v193_v3, 1e-08  ;;  %v187_v27 = vmul.f32 %v412_v17, %v181_v0  ;;  %v188_v30 = vmul.f32 %v412_v17, %v182_v4  ;;  %s491_s19 = sshra.s32 %s248_s17, 4  ;;  %s497_s28 = scalar_lea.hbm %s723_s2, 32  ;;  %s492_s19 = int_to_ptr.hbm [resolvable:$true] %s491_s19 }
  0x34   : > { %v192_v8 = vmax.f32 %v190_v5, 1e-08  ;;  %s493_s25 = scalar_lea.hbm %s492_s19, 16  ;;  %p498_p0 = scmp.lt.s32.totalorder %s492_s19, %s723_s2 }
  0x35   : > { %v196_v9 = vperm.slane %v194_v7, 0  ;;  %p494_p4 = scmp.ne.s32.totalorder %s492_s19, %s493_s25  ;;  %p499_p7 = scmp.lt.s32.totalorder %s497_s28, %s493_s25 }
  0x37   : > { %v198_v10 = vmul.f32 %v196_v9, %v191_v6  ;;  %v199_v11 = vmul.f32 %v196_v9, %v192_v8  ;;  %p495_p6 = pnand %p494_p4, %p621_p11  ;;  %p500_p5 = por %p499_p7, %p498_p0 }
  0x39   : > { %413 = vrcp.f32 %v198_v10  ;;  %vm205_vm0 = vweird.f32 %v198_v10  ;;  %v211_v15 = vand.u32 2147483648, %v198_v10  ;;  %v209_v19 = vand.u32 2147483647, %v198_v10  ;;  %p496_p13 = pneg %p495_p6 }
  0x3a   : > { %415 = vrcp.f32 %v199_v11  ;;  %v226_v20 = vand.u32 2147483648, %v199_v11  ;;  %vm220_vm2 = vweird.f32 %v199_v11  ;;  %v224_v22 = vand.u32 2147483647, %v199_v11 }
  0x3b   : > { %v212_v25 = vor.u32 1.1754944e-38, %v211_v15  ;;  %vm210_vm5 = vcmp.eq.f32.partialorder %v209_v19, 8.507059e+37  ;;  %p501_p8 = pnand %p500_p5, %p496_p13 }
  0x3c   : > { %v227_v29 = vor.u32 1.1754944e-38, %v226_v20  ;;  %vm225_vm7 = vcmp.eq.f32.partialorder %v224_v22, 8.507059e+37 }
  0x3f   : > { %v414_v12 = vpop.eup %413 }
  0x40   : > { %v416_v13 = vpop.eup %415  ;;  %v201_v14 = vmul.f32 %v414_v12, %v198_v10  ;;  %vm206_vm1 = vweird.f32 %v414_v12 }
  0x41   : > { %v216_v16 = vmul.f32 %v416_v13, %v199_v11  ;;  %vm221_vm3 = vweird.f32 %v416_v13  ;;  %vm681_vm4 = vmor %vm205_vm0, %vm206_vm1 }
  0x42   : > { %v202_v18 = vsub.f32 1.0, %v201_v14  ;;  %vm222_vm6 = vmor %vm220_vm2, %vm221_vm3 }
  0x43   : > { %v217_v21 = vsub.f32 1.0, %v216_v16 }
  0x44   : > { %v203_v23 = vmul.f32 %v414_v12, %v202_v18 }
  0x45   : > { %v218_v26 = vmul.f32 %v416_v13, %v217_v21 }
  0x46   : > { %v204_v28 = vadd.f32 %v414_v12, %v203_v23 }
  0x47   : > { %v219_v31 = vadd.f32 %v416_v13, %v218_v26 }
  0x48   : > { %v208_v32 = vsel %vm681_vm4, %v414_v12, %v204_v28 }
  0x49   : > { %v213_v33 = vsel %vm210_vm5, %v212_v25, %v208_v32  ;;  %v223_v34 = vsel %vm222_vm6, %v416_v13, %v219_v31 }
  0x4a   : > { %v214_v35 = vmul.f32 %v213_v33, %v187_v27  ;;  %v228_v36 = vsel %vm225_vm7, %v227_v29, %v223_v34 }
  0x4b   : > { %v229_v37 = vmul.f32 %v228_v36, %v188_v30 }
  0x4c   : > { %230 = vst [vmem:[%s178_s14] sm:$0xff] %v214_v35 }
  0x4d   : > { %231 = vst [vmem:[%s178_s14 + $0x8] sm:$0xff] %v229_v37 }
  0x4e   : > { %504 = shalt.err (!%p501_p8)
}
  0x4f   : > { %s552_s3 = smov 128   ;;  %s553_s5 = smov 8  }
  0x50   : > { %357 = dma.vmem_to_hbm [thread:$0]  (%p621_p11), %s246_s16, 256, %s248_s17, %s233_s24, %s552_s3, %s552_s3, %s553_s5  }
  0x51 PF: > { %s262_s6 = sand.u32 1, %s535_s9   ;;  %p732_p9 = scmp.ge.s32.totalorder %s547_s12, 2 }
  0x52   : > { %s263_s7 = scalar_lea.sflag [#allocation4], %s262_s6 }
  0x53   : > { %p368_p10 = pnand %p732_p9, %p625_p12 }
  0x55   : > { %p369_p1 = pneg %p368_p10 }
  0x57   : > { %530 = dma.done.wait (%p369_p1), %s263_s7, 256  }
  0x58   : > { %532 = vsyncadd (%p369_p1), %s263_s7, 4294967040  ;;  %p16_p2 = scmp.ge.s32.totalorder %s594_s15, 4   ;;  %s733_s9 = smov %s539_s10 }
  0x59   : > { %s734_s10 = smov %s543_s11  ;;  %s735_s11 = smov %s606_s18 }
  0x5a   : > { %s736_s12 = smov %s594_s15  ;;  %18 = sbr.rel (!%p16_p2) target bundleno = 6 (0x6), region = 78 }
  0x5f   :  { %269 = vsyncpa [#allocation3], 1 }
  0x60   :  { %271 = vsyncpa [#allocation3 + $0x1], 1 }
  0x61   :  { %272 = vsyncpa [#allocation6], 1 }
  0x62   :  { %274 = vsyncpa [#allocation6 + $0x1], 1 }
  0x63   :  { %275 = vsyncpa [#allocation4], 1 }
  0x64   :  { %277 = vsyncpa [#allocation4 + $0x1], 1 }

</bundles_post_ra>
